<compile_context>
chip_gen: v6e
topology: v6e:2x2x1
jax: 0.10.0
libtpu: 0.0.40
codegen_flags: <defaults>
</compile_context>

<pallas_src>
import jax
import jax.numpy as jnp
from jax import lax
from jax.experimental import pallas as pl
from jax.experimental.pallas import tpu as pltpu

PAD = 3  # 7x7 conv, padding=3 ("same")


# --------------------------------------------------------------------------- #
# kernel                                                                      #
# --------------------------------------------------------------------------- #
def _make_caim_kernel(Bn, C, HW):
    inv_hw = 1.0 / float(HW)
    inv_c = 1.0 / float(C)
    # "NT" contraction: lhs (m, k) x rhs (n, k) -> (m, n)
    nt_dims = (((1,), (1,)), ((), ()))

    def kernel(x_ref, cm_ref,                              # (Bn, C, HW), (2*HW, HW)
               w1a_ref, b1a_ref, w2a_ref, b2a_ref,         # ca_avg MLP (row-major)
               w1m_ref, b1m_ref, w2m_ref, b2m_ref,         # ca_max MLP (row-major)
               wc1a_ref, wc1m_ref, bc1_ref,                # conv1 split: (C,C),(C,C),(C,1)
               prelu_ref,                                  # (2,) SMEM: PReLU slopes
               out_ref):                                   # (Bn, C, HW)
        x = x_ref[...]                                     # (Bn, C, HW)

        # ---- channel-attention pooling: lane reductions over HW (exact) --------
        pooled_avg = jnp.sum(x, axis=2) * inv_hw           # (Bn, C)
        pooled_max = jnp.max(x, axis=2)                    # (Bn, C)

        # ---- spatial maps: sublane reductions over C, kept lane-dense ----------
        avg_map = jnp.sum(x, axis=1) * inv_c               # (Bn, HW)
        max_map = jnp.max(x, axis=1)                       # (Bn, HW)
        maps = jnp.concatenate([avg_map, max_map], axis=1)  # (Bn, 2*HW)

        # ---- 7x7 "same" conv as ONE MXU matmul against the precomputed matrix --
        x1 = jnp.dot(maps, cm_ref[...],
                     preferred_element_type=jnp.float32)   # (Bn, HW)

        # ---- batched channel-attention MLPs (whole block at once) --------------
        slope_a = prelu_ref[0]
        slope_m = prelu_ref[1]

        def mlp(p, w1, b1, w2, b2, slope):
            h = jnp.dot(p, w1, preferred_element_type=jnp.float32) + b1
            h = jnp.where(h > 0.0, h, slope * h)           # PReLU (scalar slope)
            return jnp.dot(h, w2, preferred_element_type=jnp.float32) + b2

        w_avg = mlp(pooled_avg, w1a_ref[...], b1a_ref[...],
                    w2a_ref[...], b2a_ref[...], slope_a)   # (Bn, C)
        w_max = mlp(pooled_max, w1m_ref[...], b1m_ref[...],
                    w2m_ref[...], b2m_ref[...], slope_m)   # (Bn, C)

        # ---- conv1 (1x1): channel-weight COLUMNS (C, Bn) directly (no transpose)
        w_cols = (lax.dot_general(wc1a_ref[...], w_avg, nt_dims,
                                  preferred_element_type=jnp.float32)
                  + lax.dot_general(wc1m_ref[...], w_max, nt_dims,
                                    preferred_element_type=jnp.float32)
                  + bc1_ref[...])                          # (C, Bn)

        # ---- gating: out[b] = sigmoid(w[:, b] (outer) x1[b]); dense (C, HW) store
        for b in range(Bn):          # tiny static loop; all values die at the store
            z = w_cols[:, b:b + 1] * x1[b:b + 1, :]        # (C, 1)*(1, HW) -> (C, HW)
            # explicit sigmoid: exp + reciprocal stay on the EUP slot
            out_ref[b] = pl.reciprocal(1.0 + jnp.exp(-z), approx=False)

    return kernel


# --------------------------------------------------------------------------- #
# wrapper helpers                                                             #
# --------------------------------------------------------------------------- #
def _pad_to(v, m):
    return ((v + m - 1) // m) * m


def _select_block_and_vmem(N, C, HW, max_bn=8):
    """Pick the per-step batch block Bn and an explicit VMEM limit using
    (8,128)-tile-padded footprints and a per-generation policy."""
    plane = 4 * _pad_to(C, 8) * _pad_to(HW, 128)   # one (C, HW) f32 slab, tile-padded
    per_sample = 2 * plane                         # input block + output block

    try:
        vmem_cap = int(pltpu.get_tpu_info().vmem_capacity_bytes)
    except Exception:                              # not resolvable: be conservative
        vmem_cap = 64 << 20
    dual_tc_like = vmem_cap <= (96 << 20)          # v7x: 64 MiB/TC, 2 TCs per chip

    conv_mat_bytes = 4 * _pad_to(2 * HW, 8) * _pad_to(HW, 128)
    fixed = 2 * conv_mat_bytes + (4 << 20)         # resident conv matrix + weights/slack

    if dual_tc_like:
        block_budget = 24 << 20                    # double-buffered blocks budget
        limit_cap = 52 << 20
    else:                                          # single-TC v5e/v6e: 128 MiB, go big
        block_budget = 80 << 20
        limit_cap = 100 << 20

    candidates = [bn for bn in range(1, min(N, max_bn) + 1)
                  if N % bn == 0 and 2 * bn * per_sample <= block_budget]
    if not candidates:
        candidates = [1]
    if dual_tc_like and N >= 2:
        # prefer an even grid count so the 2 TensorCores split the grid cleanly
        even = [bn for bn in candidates if (N // bn) % 2 == 0]
        bn = max(even) if even else max(candidates)
    else:
        bn = max(candidates)                       # single TC: biggest block that fits

    need = 2 * bn * per_sample + fixed
    vmem_limit = max(32 << 20, min(limit_cap, need + need // 4))
    vmem_limit = max(vmem_limit, need)
    return bn, int(vmem_limit)


def _build_conv_matrix(conv_w, H, W):
    """Express the 7x7 'same' conv over the (avg, max) channel maps as an explicit
    (2*H*W, H*W) matrix: x1_flat = [avg_flat | max_flat] @ M.  Zero padding and both
    input channels are baked into M, so the kernel needs no padding/shifting/masking.
    Intended for modest spatial sizes (H*W up to a few thousand)."""
    HW = H * W
    rows, cols, chans, taps = [], [], [], []
    for ch in range(2):
        for i in range(H):
            for j in range(W):
                p_out = i * W + j
                for dh in range(-PAD, PAD + 1):
                    ii = i + dh
                    if ii < 0 or ii >= H:
                        continue
                    for dw in range(-PAD, PAD + 1):
                        jj = j + dw
                        if jj < 0 or jj >= W:
                            continue
                        rows.append(ch * HW + ii * W + jj)
                        cols.append(p_out)
                        chans.append(ch)
                        taps.append((dh + PAD) * 7 + (dw + PAD))
    kflat = conv_w.reshape(2, 7 * 7).astype(jnp.float32)
    vals = kflat[jnp.array(chans), jnp.array(taps)]
    mat = jnp.zeros((2 * HW, HW), jnp.float32)
    return mat.at[jnp.array(rows), jnp.array(cols)].add(vals)


# --------------------------------------------------------------------------- #
# public wrapper                                                              #
# --------------------------------------------------------------------------- #
def caim_pallas(x, params):
    """x: NCHW float32. Returns NCHW float32 of the same shape."""
    N, C, H, W = x.shape
    C2 = C // 2
    HW = H * W

    # Lane-dense input: free metadata reshape, no pad pass, no strided DMA rows.
    x_flat = x.astype(jnp.float32).reshape(N, C, HW)

    # Parameter plumbing (plain JAX): row-major MLP weights (no in-kernel transposes).
    w1a = params["avg_w1"].T                     # (C, C2)
    b1a = params["avg_b1"].reshape(1, C2)
    w2a = params["avg_w2"].T                     # (C2, C)
    b2a = params["avg_b2"].reshape(1, C)
    w1m = params["max_w1"].T
    b1m = params["max_b1"].reshape(1, C2)
    w2m = params["max_w2"].T
    b2m = params["max_b2"].reshape(1, C)
    wc1a = params["conv1_w"][:, :C]              # (C, C)  -- avg half of the 1x1 conv
    wc1m = params["conv1_w"][:, C:]              # (C, C)  -- max half
    bc1 = params["conv1_b"].reshape(C, 1)
    prelu = jnp.stack([params["avg_prelu"].reshape(()),
                       params["max_prelu"].reshape(())]).astype(jnp.float32)
    conv_mat = _build_conv_matrix(params["conv_w"], H, W)   # (2*HW, HW)

    Bn, vmem_limit = _select_block_and_vmem(N, C, HW)
    grid = (N // Bn,)

    def full_spec(shape):
        nd = len(shape)
        return pl.BlockSpec(shape, lambda n, _nd=nd: (0,) * _nd)

    smem_spec = pl.BlockSpec(memory_space=pltpu.MemorySpace.SMEM)

    grid_spec = pltpu.PrefetchScalarGridSpec(
        num_scalar_prefetch=0,
        grid=grid,
        in_specs=[
            pl.BlockSpec((Bn, C, HW), lambda n: (n, 0, 0)),
            full_spec(conv_mat.shape),
            full_spec(w1a.shape), full_spec(b1a.shape),
            full_spec(w2a.shape), full_spec(b2a.shape),
            full_spec(w1m.shape), full_spec(b1m.shape),
            full_spec(w2m.shape), full_spec(b2m.shape),
            full_spec(wc1a.shape), full_spec(wc1m.shape), full_spec(bc1.shape),
            smem_spec,
        ],
        out_specs=pl.BlockSpec((Bn, C, HW), lambda n: (n, 0, 0)),
    )

    out_flat = pl.pallas_call(
        _make_caim_kernel(Bn, C, HW),
        out_shape=jax.ShapeDtypeStruct((N, C, HW), jnp.float32),
        grid_spec=grid_spec,
        compiler_params=pltpu.CompilerParams(
            dimension_semantics=("parallel",),
            vmem_limit_bytes=vmem_limit),
    )(x_flat, conv_mat, w1a, b1a, w2a, b2a, w1m, b1m, w2m, b2m,
      wc1a, wc1m, bc1, prelu)

    # Free reshape of the contiguous NCHW-flat result back to (N, C, H, W).
    return out_flat.reshape(N, C, H, W)


# --------------------------------------------------------------------------- #
# pure-JAX reference (mirrors the PyTorch forward exactly)                    #
# --------------------------------------------------------------------------- #
def caim_reference(x, params):
    N, C, H, W = x.shape

    def mlp(v, w1, b1, a, w2, b2):
        h = v @ w1.T + b1
        h = jnp.where(h > 0, h, a * h)
        return h @ w2.T + b2

    pooled_avg = jnp.mean(x, axis=(2, 3))
    pooled_max = jnp.max(x, axis=(2, 3))
    a_avg = params["avg_prelu"].reshape(())
    a_max = params["max_prelu"].reshape(())
    w_avg = mlp(pooled_avg, params["avg_w1"], params["avg_b1"], a_avg,
                params["avg_w2"], params["avg_b2"])
    w_max = mlp(pooled_max, params["max_w1"], params["max_b1"], a_max,
                params["max_w2"], params["max_b2"])
    w = jnp.concatenate([w_avg, w_max], axis=1) @ params["conv1_w"].T + params["conv1_b"]

    avgout = jnp.mean(x, axis=1, keepdims=True)
    maxout = jnp.max(x, axis=1, keepdims=True)
    x_sa = jnp.concatenate([avgout, maxout], axis=1)
    x1 = lax.conv_general_dilated(x_sa, params["conv_w"], (1, 1),
                                  [(PAD, PAD), (PAD, PAD)],
                                  dimension_numbers=("NCHW", "OIHW", "NCHW"))
    return jax.nn.sigmoid(w[:, :, None, None] * x1)


# --------------------------------------------------------------------------- #
if __name__ == "__main__":
    key = jax.random.PRNGKey(0)
    N, C, H, W = 2, 8, 16, 16            # channels must be even (channels // 2)
    C2 = C // 2
    keys = jax.random.split(key, 12)

    def rnd(k, shape, scale=0.1):
        return (scale * jax.random.normal(k, shape)).astype(jnp.float32)

    # Deterministic synthetic parameters (PyTorch shapes, 1x1 conv kernels squeezed).
    params = {
        "avg_w1": rnd(keys[0], (C2, C)), "avg_b1": rnd(keys[1], (C2,)),
        "avg_w2": rnd(keys[2], (C, C2)), "avg_b2": rnd(keys[3], (C,)),
        "avg_prelu": jnp.full((1,), 0.25, jnp.float32),   # nn.PReLU default init
        "max_w1": rnd(keys[4], (C2, C)), "max_b1": rnd(keys[5], (C2,)),
        "max_w2": rnd(keys[6], (C, C2)), "max_b2": rnd(keys[7], (C,)),
        "max_prelu": jnp.full((1,), 0.25, jnp.float32),
        "conv1_w": rnd(keys[8], (C, 2 * C)), "conv1_b": rnd(keys[9], (C,)),
        "conv_w": rnd(keys[10], (1, 2, 7, 7)),            # 7x7 spatial conv, no bias
    }
    x = jax.random.normal(keys[11], (N, C, H, W), dtype=jnp.float32)

    out = jax.block_until_ready(caim_pallas(x, params))
    ref = jax.block_until_ready(caim_reference(x, params))

    assert out.shape == (N, C, H, W)
    max_err = float(jnp.max(jnp.abs(out - ref)))
    # Both the kernel (MLPs, 1x1 conv, conv-as-matmul) and the reference (matmuls +
    # conv_general_dilated) run f32 contractions on the MXU at default precision;
    # allow for the corresponding rounding differences.
    assert max_err < 3e-3, f"kernel/reference mismatch: max abs err = {max_err}"
    print("KERNEL_OK")
</pallas_src>

<mosaic_0001>
module attributes {stable_mosaic.version = 11 : i64} {
  func.func @kernel(%arg0: i32, %arg1: memref<1x8x256xf32, #tpu.memory_space<vmem>>, %arg2: memref<512x256xf32, #tpu.memory_space<vmem>>, %arg3: memref<8x4xf32, #tpu.memory_space<vmem>>, %arg4: memref<1x4xf32, #tpu.memory_space<vmem>>, %arg5: memref<4x8xf32, #tpu.memory_space<vmem>>, %arg6: memref<1x8xf32, #tpu.memory_space<vmem>>, %arg7: memref<8x4xf32, #tpu.memory_space<vmem>>, %arg8: memref<1x4xf32, #tpu.memory_space<vmem>>, %arg9: memref<4x8xf32, #tpu.memory_space<vmem>>, %arg10: memref<1x8xf32, #tpu.memory_space<vmem>>, %arg11: memref<8x8xf32, #tpu.memory_space<vmem>>, %arg12: memref<8x8xf32, #tpu.memory_space<vmem>>, %arg13: memref<8x1xf32, #tpu.memory_space<vmem>>, %arg14: memref<2xf32, #tpu.memory_space<smem>>, %arg15: memref<1x8x256xf32, #tpu.memory_space<vmem>>) attributes {dimension_semantics = [#tpu.dimension_semantics<parallel>], iteration_bounds = array<i64: 2>, scalar_prefetch = 0 : i64, scratch_operands = 0 : i64, tpu.core_type = #tpu.core_type<tc>, window_params = [{transform_indices = @transform_0, window_bounds = array<i64: 1, 8, 256>}, {pipeline_mode = #tpu.pipeline_mode<synchronous>, transform_indices = @transform_1, window_bounds = array<i64: 512, 256>}, {pipeline_mode = #tpu.pipeline_mode<synchronous>, transform_indices = @transform_2, window_bounds = array<i64: 8, 4>}, {pipeline_mode = #tpu.pipeline_mode<synchronous>, transform_indices = @transform_3, window_bounds = array<i64: 1, 4>}, {pipeline_mode = #tpu.pipeline_mode<synchronous>, transform_indices = @transform_4, window_bounds = array<i64: 4, 8>}, {pipeline_mode = #tpu.pipeline_mode<synchronous>, transform_indices = @transform_5, window_bounds = array<i64: 1, 8>}, {pipeline_mode = #tpu.pipeline_mode<synchronous>, transform_indices = @transform_6, window_bounds = array<i64: 8, 4>}, {pipeline_mode = #tpu.pipeline_mode<synchronous>, transform_indices = @transform_7, window_bounds = array<i64: 1, 4>}, {pipeline_mode = #tpu.pipeline_mode<synchronous>, transform_indices = @transform_8, window_bounds = array<i64: 4, 8>}, {pipeline_mode = #tpu.pipeline_mode<synchronous>, transform_indices = @transform_9, window_bounds = array<i64: 1, 8>}, {pipeline_mode = #tpu.pipeline_mode<synchronous>, transform_indices = @transform_10, window_bounds = array<i64: 8, 8>}, {pipeline_mode = #tpu.pipeline_mode<synchronous>, transform_indices = @transform_11, window_bounds = array<i64: 8, 8>}, {pipeline_mode = #tpu.pipeline_mode<synchronous>, transform_indices = @transform_12, window_bounds = array<i64: 8, 1>}, {transform_indices = @transform_13, window_bounds = array<i64: 2>}, {transform_indices = @transform_14, window_bounds = array<i64: 1, 8, 256>}]} {
    %c0 = arith.constant 0 : index
    %c0_0 = arith.constant 0 : index
    %c0_1 = arith.constant 0 : index
    %0 = vector.load %arg1[%c0, %c0_0, %c0_1] : memref<1x8x256xf32, #tpu.memory_space<vmem>>, vector<1x8x256xf32>
    %cst = arith.constant dense<0.000000e+00> : vector<1x8xf32>
    %1 = vector.multi_reduction <add>, %0, %cst [2] : vector<1x8x256xf32> to vector<1x8xf32>
    %cst_2 = arith.constant 3.906250e-03 : f32
    %2 = vector.broadcast %cst_2 : f32 to vector<1x8xf32>
    %3 = arith.mulf %1, %2 : vector<1x8xf32>
    %cst_3 = arith.constant dense<0xFF800000> : vector<1x8xf32>
    %4 = vector.multi_reduction <maximumf>, %0, %cst_3 [2] : vector<1x8x256xf32> to vector<1x8xf32>
    %cst_4 = arith.constant dense<0.000000e+00> : vector<1x256xf32>
    %5 = vector.multi_reduction <add>, %0, %cst_4 [1] : vector<1x8x256xf32> to vector<1x256xf32>
    %cst_5 = arith.constant 1.250000e-01 : f32
    %6 = vector.broadcast %cst_5 : f32 to vector<1x256xf32>
    %7 = arith.mulf %5, %6 : vector<1x256xf32>
    %cst_6 = arith.constant dense<0xFF800000> : vector<1x256xf32>
    %8 = vector.multi_reduction <maximumf>, %0, %cst_6 [1] : vector<1x8x256xf32> to vector<1x256xf32>
    %9 = tpu.concatenate %7, %8 in 1 : vector<1x256xf32>, vector<1x256xf32> -> vector<1x512xf32>
    %c0_7 = arith.constant 0 : index
    %c0_8 = arith.constant 0 : index
    %10 = vector.load %arg2[%c0_7, %c0_8] : memref<512x256xf32, #tpu.memory_space<vmem>>, vector<512x256xf32>
    %cst_9 = arith.constant dense<0.000000e+00> : vector<1x256xf32>
    %11 = tpu.matmul %9, %10, %cst_9 {dimension_numbers = #tpu.dot_dimension_numbers<[1], [0], [0], [1], [0, 0, 1, 1], [], []>} : vector<1x512xf32>, vector<512x256xf32>, vector<1x256xf32> -> vector<1x256xf32>
    %c0_10 = arith.constant 0 : index
    %12 = memref.load %arg14[%c0_10] : memref<2xf32, #tpu.memory_space<smem>>
    %c1 = arith.constant 1 : index
    %13 = memref.load %arg14[%c1] : memref<2xf32, #tpu.memory_space<smem>>
    %c0_11 = arith.constant 0 : index
    %c0_12 = arith.constant 0 : index
    %14 = vector.load %arg3[%c0_11, %c0_12] : memref<8x4xf32, #tpu.memory_space<vmem>>, vector<8x4xf32>
    %c0_13 = arith.constant 0 : index
    %c0_14 = arith.constant 0 : index
    %15 = vector.load %arg4[%c0_13, %c0_14] : memref<1x4xf32, #tpu.memory_space<vmem>>, vector<1x4xf32>
    %c0_15 = arith.constant 0 : index
    %c0_16 = arith.constant 0 : index
    %16 = vector.load %arg5[%c0_15, %c0_16] : memref<4x8xf32, #tpu.memory_space<vmem>>, vector<4x8xf32>
    %c0_17 = arith.constant 0 : index
    %c0_18 = arith.constant 0 : index
    %17 = vector.load %arg6[%c0_17, %c0_18] : memref<1x8xf32, #tpu.memory_space<vmem>>, vector<1x8xf32>
    %cst_19 = arith.constant dense<0.000000e+00> : vector<1x4xf32>
    %18 = tpu.matmul %3, %14, %cst_19 {dimension_numbers = #tpu.dot_dimension_numbers<[1], [0], [0], [1], [0, 0, 1, 1], [], []>} : vector<1x8xf32>, vector<8x4xf32>, vector<1x4xf32> -> vector<1x4xf32>
    %19 = arith.addf %18, %15 : vector<1x4xf32>
    %cst_20 = arith.constant 0.000000e+00 : f32
    %20 = vector.broadcast %cst_20 : f32 to vector<1x4xf32>
    %21 = arith.cmpf ogt, %19, %20 : vector<1x4xf32>
    %22 = vector.broadcast %12 : f32 to vector<1x4xf32>
    %23 = arith.mulf %22, %19 : vector<1x4xf32>
    %24 = arith.select %21, %19, %23 : vector<1x4xi1>, vector<1x4xf32>
    %cst_21 = arith.constant dense<0.000000e+00> : vector<1x8xf32>
    %25 = tpu.matmul %24, %16, %cst_21 {dimension_numbers = #tpu.dot_dimension_numbers<[1], [0], [0], [1], [0, 0, 1, 1], [], []>} : vector<1x4xf32>, vector<4x8xf32>, vector<1x8xf32> -> vector<1x8xf32>
    %26 = arith.addf %25, %17 : vector<1x8xf32>
    %c0_22 = arith.constant 0 : index
    %c0_23 = arith.constant 0 : index
    %27 = vector.load %arg7[%c0_22, %c0_23] : memref<8x4xf32, #tpu.memory_space<vmem>>, vector<8x4xf32>
    %c0_24 = arith.constant 0 : index
    %c0_25 = arith.constant 0 : index
    %28 = vector.load %arg8[%c0_24, %c0_25] : memref<1x4xf32, #tpu.memory_space<vmem>>, vector<1x4xf32>
    %c0_26 = arith.constant 0 : index
    %c0_27 = arith.constant 0 : index
    %29 = vector.load %arg9[%c0_26, %c0_27] : memref<4x8xf32, #tpu.memory_space<vmem>>, vector<4x8xf32>
    %c0_28 = arith.constant 0 : index
    %c0_29 = arith.constant 0 : index
    %30 = vector.load %arg10[%c0_28, %c0_29] : memref<1x8xf32, #tpu.memory_space<vmem>>, vector<1x8xf32>
    %cst_30 = arith.constant dense<0.000000e+00> : vector<1x4xf32>
    %31 = tpu.matmul %4, %27, %cst_30 {dimension_numbers = #tpu.dot_dimension_numbers<[1], [0], [0], [1], [0, 0, 1, 1], [], []>} : vector<1x8xf32>, vector<8x4xf32>, vector<1x4xf32> -> vector<1x4xf32>
    %32 = arith.addf %31, %28 : vector<1x4xf32>
    %cst_31 = arith.constant 0.000000e+00 : f32
    %33 = vector.broadcast %cst_31 : f32 to vector<1x4xf32>
    %34 = arith.cmpf ogt, %32, %33 : vector<1x4xf32>
    %35 = vector.broadcast %13 : f32 to vector<1x4xf32>
    %36 = arith.mulf %35, %32 : vector<1x4xf32>
    %37 = arith.select %34, %32, %36 : vector<1x4xi1>, vector<1x4xf32>
    %cst_32 = arith.constant dense<0.000000e+00> : vector<1x8xf32>
    %38 = tpu.matmul %37, %29, %cst_32 {dimension_numbers = #tpu.dot_dimension_numbers<[1], [0], [0], [1], [0, 0, 1, 1], [], []>} : vector<1x4xf32>, vector<4x8xf32>, vector<1x8xf32> -> vector<1x8xf32>
    %39 = arith.addf %38, %30 : vector<1x8xf32>
    %c0_33 = arith.constant 0 : index
    %c0_34 = arith.constant 0 : index
    %40 = vector.load %arg11[%c0_33, %c0_34] : memref<8x8xf32, #tpu.memory_space<vmem>>, vector<8x8xf32>
    %cst_35 = arith.constant dense<0.000000e+00> : vector<8x1xf32>
    %41 = tpu.matmul %40, %26, %cst_35 {dimension_numbers = #tpu.dot_dimension_numbers<[1], [1], [0], [0], [0, 0, 1, 0], [], []>} : vector<8x8xf32>, vector<1x8xf32>, vector<8x1xf32> -> vector<8x1xf32>
    %c0_36 = arith.constant 0 : index
    %c0_37 = arith.constant 0 : index
    %42 = vector.load %arg12[%c0_36, %c0_37] : memref<8x8xf32, #tpu.memory_space<vmem>>, vector<8x8xf32>
    %cst_38 = arith.constant dense<0.000000e+00> : vector<8x1xf32>
    %43 = tpu.matmul %42, %39, %cst_38 {dimension_numbers = #tpu.dot_dimension_numbers<[1], [1], [0], [0], [0, 0, 1, 0], [], []>} : vector<8x8xf32>, vector<1x8xf32>, vector<8x1xf32> -> vector<8x1xf32>
    %44 = arith.addf %41, %43 : vector<8x1xf32>
    %c0_39 = arith.constant 0 : index
    %c0_40 = arith.constant 0 : index
    %45 = vector.load %arg13[%c0_39, %c0_40] : memref<8x1xf32, #tpu.memory_space<vmem>>, vector<8x1xf32>
    %46 = arith.addf %44, %45 : vector<8x1xf32>
    %47 = vector.broadcast %46 : vector<8x1xf32> to vector<8x256xf32>
    %48 = vector.broadcast %11 : vector<1x256xf32> to vector<8x256xf32>
    %49 = arith.mulf %47, %48 : vector<8x256xf32>
    %cst_41 = arith.constant 0.000000e+00 : f32
    %50 = vector.broadcast %cst_41 : f32 to vector<8x256xf32>
    %51 = arith.subf %50, %49 : vector<8x256xf32>
    %52 = math.exp %51 : vector<8x256xf32>
    %cst_42 = arith.constant 1.000000e+00 : f32
    %53 = vector.broadcast %cst_42 : f32 to vector<8x256xf32>
    %54 = arith.addf %53, %52 : vector<8x256xf32>
    %55 = tpu.reciprocal %54 : vector<8x256xf32> -> vector<8x256xf32>
    %c0_43 = arith.constant 0 : index
    %c0_44 = arith.constant 0 : index
    %c0_45 = arith.constant 0 : index
    %56 = vector.load %arg15[%c0_43, %c0_44, %c0_45] : memref<1x8x256xf32, #tpu.memory_space<vmem>>, vector<1x8x256xf32>
    %57 = vector.shape_cast %56 : vector<1x8x256xf32> to vector<8x256xf32>
    %58 = vector.shape_cast %55 : vector<8x256xf32> to vector<1x8x256xf32>
    tpu.vector_store %arg15[%c0_43, %c0_44, %c0_45], %58 {strides = array<i32>} : memref<1x8x256xf32, #tpu.memory_space<vmem>>, vector<1x8x256xf32>,
    return
  }
  func.func @transform_0(%arg0: i32) -> (i32, i32, i32) {
    %c0_i32 = arith.constant 0 : i32
    %c0_i32_0 = arith.constant 0 : i32
    %c0_i32_1 = arith.constant 0 : i32
    return %arg0, %c0_i32, %c0_i32_0 : i32, i32, i32
  }
  func.func @transform_1(%arg0: i32) -> (i32, i32) {
    %c0_i32 = arith.constant 0 : i32
    %c0_i32_0 = arith.constant 0 : i32
    %c0_i32_1 = arith.constant 0 : i32
    return %c0_i32, %c0_i32_0 : i32, i32
  }
  func.func @transform_2(%arg0: i32) -> (i32, i32) {
    %c0_i32 = arith.constant 0 : i32
    %c0_i32_0 = arith.constant 0 : i32
    %c0_i32_1 = arith.constant 0 : i32
    return %c0_i32, %c0_i32_0 : i32, i32
  }
  func.func @transform_3(%arg0: i32) -> (i32, i32) {
    %c0_i32 = arith.constant 0 : i32
    %c0_i32_0 = arith.constant 0 : i32
    %c0_i32_1 = arith.constant 0 : i32
    return %c0_i32, %c0_i32_0 : i32, i32
  }
  func.func @transform_4(%arg0: i32) -> (i32, i32) {
    %c0_i32 = arith.constant 0 : i32
    %c0_i32_0 = arith.constant 0 : i32
    %c0_i32_1 = arith.constant 0 : i32
    return %c0_i32, %c0_i32_0 : i32, i32
  }
  func.func @transform_5(%arg0: i32) -> (i32, i32) {
    %c0_i32 = arith.constant 0 : i32
    %c0_i32_0 = arith.constant 0 : i32
    %c0_i32_1 = arith.constant 0 : i32
    return %c0_i32, %c0_i32_0 : i32, i32
  }
  func.func @transform_6(%arg0: i32) -> (i32, i32) {
    %c0_i32 = arith.constant 0 : i32
    %c0_i32_0 = arith.constant 0 : i32
    %c0_i32_1 = arith.constant 0 : i32
    return %c0_i32, %c0_i32_0 : i32, i32
  }
  func.func @transform_7(%arg0: i32) -> (i32, i32) {
    %c0_i32 = arith.constant 0 : i32
    %c0_i32_0 = arith.constant 0 : i32
    %c0_i32_1 = arith.constant 0 : i32
    return %c0_i32, %c0_i32_0 : i32, i32
  }
  func.func @transform_8(%arg0: i32) -> (i32, i32) {
    %c0_i32 = arith.constant 0 : i32
    %c0_i32_0 = arith.constant 0 : i32
    %c0_i32_1 = arith.constant 0 : i32
    return %c0_i32, %c0_i32_0 : i32, i32
  }
  func.func @transform_9(%arg0: i32) -> (i32, i32) {
    %c0_i32 = arith.constant 0 : i32
    %c0_i32_0 = arith.constant 0 : i32
    %c0_i32_1 = arith.constant 0 : i32
    return %c0_i32, %c0_i32_0 : i32, i32
  }
  func.func @transform_10(%arg0: i32) -> (i32, i32) {
    %c0_i32 = arith.constant 0 : i32
    %c0_i32_0 = arith.constant 0 : i32
    %c0_i32_1 = arith.constant 0 : i32
    return %c0_i32, %c0_i32_0 : i32, i32
  }
  func.func @transform_11(%arg0: i32) -> (i32, i32) {
    %c0_i32 = arith.constant 0 : i32
    %c0_i32_0 = arith.constant 0 : i32
    %c0_i32_1 = arith.constant 0 : i32
    return %c0_i32, %c0_i32_0 : i32, i32
  }
  func.func @transform_12(%arg0: i32) -> (i32, i32) {
    %c0_i32 = arith.constant 0 : i32
    %c0_i32_0 = arith.constant 0 : i32
    %c0_i32_1 = arith.constant 0 : i32
    return %c0_i32, %c0_i32_0 : i32, i32
  }
  func.func @transform_13(%arg0: i32) -> i32 {
    %c0_i32 = arith.constant 0 : i32
    %c0_i32_0 = arith.constant 0 : i32
    return %c0_i32 : i32
  }
  func.func @transform_14(%arg0: i32) -> (i32, i32, i32) {
    %c0_i32 = arith.constant 0 : i32
    %c0_i32_0 = arith.constant 0 : i32
    %c0_i32_1 = arith.constant 0 : i32
    return %arg0, %c0_i32, %c0_i32_0 : i32, i32, i32
  }
}

</mosaic_0001>

<bundles_post_ra>
// kernel: tpu_custom_call.1
= control target key start
LH: loop header
LB: loop body
LE: loop exit
PB: predicated region body
PF: predicated region fallthrough
CT: control target
= control target key end

     0   :  { %s2152_s0 = inlined_call_operand.vmem [shape: f32[2,8,256], index: 0, kind: input, shape index: {}]   ;;  %s2153_s1 = inlined_call_operand.hbm [shape: f32[512,256], index: 1, kind: input, shape index: {}]   ;;  %s2154_s2 = inlined_call_operand.vmem [shape: f32[8,4], index: 2, kind: input, shape index: {}]   ;;  %s2155_s3 = inlined_call_operand.hbm [shape: f32[1,4], index: 3, kind: input, shape index: {}]   ;;  %s2156_s4 = inlined_call_operand.hbm [shape: f32[4,8], index: 4, kind: input, shape index: {}]   ;;  %s2157_s5 = inlined_call_operand.vmem [shape: f32[1,8], index: 5, kind: input, shape index: {}]   ;;  %s2158_s6 = inlined_call_operand.vmem [shape: f32[8,4], index: 6, kind: input, shape index: {}]   ;;  %s2159_s7 = inlined_call_operand.hbm [shape: f32[1,4], index: 7, kind: input, shape index: {}]   ;;  %s2160_s8 = inlined_call_operand.hbm [shape: f32[4,8], index: 8, kind: input, shape index: {}]   ;;  %s2161_s9 = inlined_call_operand.hbm [shape: f32[1,8], index: 9, kind: input, shape index: {}]   ;;  %s2162_s10 = inlined_call_operand.vmem [shape: f32[8,8], index: 10, kind: input, shape index: {}]   ;;  %s2163_s11 = inlined_call_operand.vmem [shape: f32[8,8], index: 11, kind: input, shape index: {}]   ;;  %s2164_s12 = inlined_call_operand.vmem [shape: f32[8,1], index: 12, kind: input, shape index: {}]   ;;  %s2165_s13 = inlined_call_operand.vmem [shape: f32[2], index: 13, kind: input, shape index: {}]   ;;  %s2166_s14 = inlined_call_operand.hbm [shape: f32[2,8,256], index: 14, kind: output, shape index: {}]  }
   0x1   :  { %2175 = sst [smem:[#allocation27_spill]] %s2155_s3 }
   0x2   :  { %2176 = sst [smem:[#allocation28_spill]] %s2159_s7 }
   0x3   :  { %19 = vsyncpa [#allocation3], 0 }
   0x4   :  { %20 = vsyncpa [#allocation7], 0 }
   0x5   :  { %21 = vsyncpa [#allocation10], 0 }
   0x6   :  { %22 = vsyncpa [#allocation13], 0 }
   0x7   :  { %23 = vsyncpa [#allocation5], 0 }
   0x8   :  { %24 = vsyncpa [#allocation4], 0 }
   0x9   :  { %26 = vsyncpa [#allocation4 + $0x1], 0  ;;  %s1914_s29 = smov 0   ;;  %s1916_s30 = smov 0  }
   0xa   :  { %s1918_s15 = smov 0   ;;  %s1920_s16 = smov 0  }
   0xb LB: > { %2177 = sst [smem:[#allocation22_spill]] %s1812_s29  ;;  %s1935_s17 = sadd.s32 4294967295, %s1824_s16   ;;  %s1824_s16 = sphi %s1920_s16, %s2204_s16   ;;  %s1820_s15 = sphi %s1918_s15, %s2206_s15   ;;  %s1816_s30 = sphi %s1916_s30, %s2208_s30   ;;  %s1812_s29 = sphi %s1914_s29, %s2207_s29  }
   0xc   : > { %2178 = sst [smem:[#allocation23_spill]] %s1820_s15  ;;  %s1386_s18 = sadd.s32 4294967294, %s1824_s16  }
   0xd   : > { %s1939_s19 = sadd.s32 1, %s1824_s16   ;;  %s338_s20 = sadd.s32 1, %s1820_s15 }
   0xe   : > { %2179 = sst [smem:[#allocation24_spill]] %s1939_s19  ;;  %s335_s21 = ssub.s32 %s1824_s16, %s1939_s19 }
   0xf   : > { %p348_p0 = scmp.ne.s32.totalorder %s1820_s15, %s1816_s30  ;;  %p336_p1 = scmp.eq.s32.totalorder %s335_s21, 0 }
  0x10   : > { %p349_p2 = scmp.eq.s32.totalorder %s1935_s17, 1  ;;  %p354_p3 = scmp.ne.s32.totalorder %s1816_s30, %s1812_s29 }
  0x11   : > { %p355_p4 = scmp.eq.s32.totalorder %s1386_s18, 1  ;;  %p1387_p7 = scmp.ge.s32.totalorder %s1824_s16, 1 }
  0x12   : > { %s1950_s22 = scalar_select %p336_p1, %s1820_s15, %s338_s20  }
  0x13   : > { %p1952_p5 = por %p349_p2, %p348_p0  ;;  %p1956_p6 = por %p355_p4, %p354_p3 }
  0x14   : > { %2180 = sst [smem:[#allocation25_spill]] %s1950_s22  ;;  %p362_p8 = scmp.lt.s32.totalorder %s1824_s16, 3 }
  0x15   : > { %s2181_s23 = scalar_select %p1952_p5, 1, 0 }
  0x16   : > { %s2182_s24 = scalar_select %p1956_p6, 1, 0 }
  0x17   : > { %p2171_p9 = scmp.eq.s32.totalorder %s1935_s17, 0  ;;  %p1963_p10 = pnand %p1387_p7, %p362_p8 }
  0x18   : > { %2183 = sst [smem:[#allocation26_spill]] %s2182_s24  ;;  %s1826_s26 = smov [#allocation6]  }
  0x19   : > { %s2184_s25 = scalar_select %p1963_p10, 1, 0 }
  0x1a   : > { %s391_s27 = sshll.u32 %s1826_s26, 4  ;;  %p1479_p11 = pneg %p1963_p10  ;;  %s392_s27 = int_to_ptr.vmem [resolvable:$true] %s391_s27 }
  0x1b   : > { %s1827_s28 = smov [#allocation9]   ;;  %s1828_s21 = smov [#allocation2]  }
  0x1c   : > { %s419_s18 = sshll.u32 %s1827_s28, 4  ;;  %p1971_p12 = pnand %p2171_p9, %p1479_p11  ;;  %s420_s18 = int_to_ptr.vmem [resolvable:$true] %s419_s18 }
  0x1d   : > { %s374_s22 = sshll.u32 %s1828_s21, 4  ;;  %s1584_s26 = scalar_lea.vmem %s392_s27, 16  ;;  %s1975_s22 = int_to_ptr.vmem [resolvable:$true] %s374_s22 }
  0x1e   : > { %p1979_p13 = pneg %p1971_p12  ;;  %p1585_p0 = scmp.ne.s32.totalorder %s392_s27, %s1584_s26 }
  0x1f   : > { %s1591_s28 = scalar_lea.vmem %s392_s27, 32  ;;  %p1592_p3 = scmp.lt.s32.totalorder %s392_s27, %s392_s27 }
  0x20   : > { %p1587_p1 = pnand %p1585_p0, %p1979_p13  ;;  %p1593_p4 = scmp.lt.s32.totalorder %s1591_s28, %s1584_s26 }
  0x22   : > { %p1588_p2 = pneg %p1587_p1  ;;  %p1594_p7 = por %p1593_p4, %p1592_p3 }
  0x24   : > { %p1595_p8 = pnand %p1594_p7, %p1588_p2 }
  0x26   : > { %1598 = shalt.err (!%p1595_p8)
}
  0x27   : > { %s2187_s3 = sld [smem:[#allocation27_spill]]  ;;  %s1610_s24 = scalar_lea.vmem %s420_s18, 16 }
  0x28   : > { %p1611_p11 = scmp.ne.s32.totalorder %s420_s18, %s1610_s24  ;;  %s1617_s29 = scalar_lea.vmem %s420_s18, 32 }
  0x29   : > { %p1618_p0 = scmp.lt.s32.totalorder %s420_s18, %s420_s18  ;;  %p1619_p1 = scmp.lt.s32.totalorder %s1617_s29, %s1610_s24 }
  0x2a   : > { %p1613_p9 = pnand %p1611_p11, %p1979_p13 }
  0x2b   : > { %p1620_p5 = por %p1619_p1, %p1618_p0 }
  0x2c   : > { %p1614_p6 = pneg %p1613_p9 }
  0x2d   : > { %1485 = dma.hbm_to_vmem [thread:$0]  (!%p1971_p12), %s2187_s3, 16, %s392_s27, [#allocation7]  }
  0x2e   : > { %p1621_p10 = pnand %p1620_p5, %p1614_p6 }
  0x30   : > { %1624 = shalt.err (!%p1621_p10)
}
  0x31   : > { %s2188_s7 = sld [smem:[#allocation28_spill]]  ;;  %s1636_s19 = scalar_lea.vmem %s1975_s22, 16384 }
  0x32   : > { %p1637_p2 = scmp.ne.s32.totalorder %s1975_s22, %s1636_s19  ;;  %p1644_p4 = scmp.lt.s32.totalorder %s1975_s22, %s1975_s22 }
  0x33   : > { %p1645_p7 = scmp.lt.s32.totalorder %s1636_s19, %s1636_s19 }
  0x34   : > { %p1639_p9 = pnand %p1637_p2, %p1979_p13 }
  0x35   : > { %p1646_p5 = por %p1645_p7, %p1644_p4 }
  0x36   : > { %p1640_p3 = pneg %p1639_p9 }
  0x37   : > { %1491 = dma.hbm_to_vmem [thread:$0]  (!%p1971_p12), %s2188_s7, 16, %s420_s18, [#allocation10]  }
  0x38   : > { %p1647_p6 = pnand %p1646_p5, %p1640_p3 }
  0x3a   : > { %1650 = shalt.err (!%p1647_p6)
}
  0x3b   : > { %s1829_s29 = smov 256   ;;  %s1830_s24 = smov 16  }
  0x3c   : > { %1482 = dma.hbm_to_vmem [thread:$0]  (!%p1971_p12), %s2153_s1, 16384, %s1975_s22, [#allocation3], %s1829_s29, %s1829_s29, %s1830_s24  }
  0x3d   : > { %s1831_s18 = smov [#allocation8]   ;;  %s1832_s28 = smov [#allocation11]  }
  0x3e   : > { %s402_s26 = sshll.u32 %s1831_s18, 4  ;;  %s430_s3 = sshll.u32 %s1832_s28, 4  ;;  %s403_s26 = int_to_ptr.vmem [resolvable:$true] %s402_s26  ;;  %s431_s3 = int_to_ptr.vmem [resolvable:$true] %s430_s3 }
  0x3f   : > { %s1662_s7 = scalar_lea.vmem %s403_s26, 64  ;;  %p1670_p0 = scmp.lt.s32.totalorder %s403_s26, %s403_s26 }
  0x40   : > { %p1663_p10 = scmp.ne.s32.totalorder %s403_s26, %s1662_s7  ;;  %p1671_p1 = scmp.lt.s32.totalorder %s1662_s7, %s1662_s7 }
  0x42   : > { %p1665_p8 = pnand %p1663_p10, %p1979_p13  ;;  %p1672_p2 = por %p1671_p1, %p1670_p0 }
  0x44   : > { %p1666_p11 = pneg %p1665_p8 }
  0x46   : > { %p1673_p9 = pnand %p1672_p2, %p1666_p11 }
  0x48   : > { %1676 = shalt.err (!%p1673_p9)
}
  0x49   : > { %1488 = dma.hbm_to_vmem [thread:$0]  (!%p1971_p12), %s2156_s4, 64, %s403_s26, [#allocation7]  }
  0x4a   : > { %s1688_s22 = scalar_lea.vmem %s431_s3, 64  ;;  %p1696_p5 = scmp.lt.s32.totalorder %s431_s3, %s431_s3 }
  0x4b   : > { %p1689_p3 = scmp.ne.s32.totalorder %s431_s3, %s1688_s22  ;;  %p1697_p6 = scmp.lt.s32.totalorder %s1688_s22, %s1688_s22 }
  0x4d   : > { %p1691_p4 = pnand %p1689_p3, %p1979_p13  ;;  %p1698_p10 = por %p1697_p6, %p1696_p5 }
  0x4f   : > { %p1692_p7 = pneg %p1691_p4 }
  0x51   : > { %p1699_p8 = pnand %p1698_p10, %p1692_p7 }
  0x53   : > { %1702 = shalt.err (!%p1699_p8)
}
  0x54   : > { %1494 = dma.hbm_to_vmem [thread:$0]  (!%p1971_p12), %s2160_s8, 64, %s431_s3, [#allocation10]  }
  0x55   : > { %s1833_s24 = smov [#allocation12]   ;;  %s461_s28 = sshll.u32 %s2165_s13, 4  ;;  %s462_s28 = int_to_ptr.vmem [resolvable:$true] %s461_s28 }
  0x56   : > { %s441_s21 = sshll.u32 %s1833_s24, 4  ;;  %s442_s21 = int_to_ptr.vmem [resolvable:$true] %s441_s21 }
  0x57   : > { %s1714_s19 = scalar_lea.vmem %s442_s21, 16  ;;  %s1721_s27 = scalar_lea.vmem %s442_s21, 32 }
  0x58   : > { %p1715_p11 = scmp.ne.s32.totalorder %s442_s21, %s1714_s19  ;;  %p1722_p2 = scmp.lt.s32.totalorder %s442_s21, %s442_s21 }
  0x59   : > { %p1723_p9 = scmp.lt.s32.totalorder %s1721_s27, %s1714_s19 }
  0x5a   : > { %p1717_p0 = pnand %p1715_p11, %p1979_p13 }
  0x5b   : > { %p1724_p3 = por %p1723_p9, %p1722_p2 }
  0x5c   : > { %p1718_p1 = pneg %p1717_p0 }
  0x5e   : > { %p1725_p4 = pnand %p1724_p3, %p1718_p1 }
  0x60   : > { %1728 = shalt.err (!%p1725_p4)
}
  0x61   : > { %1497 = dma.hbm_to_vmem [thread:$0]  (!%p1971_p12), %s2161_s9, 16, %s442_s21, [#allocation13]  }
  0x62   : > { %s1729_s7 = scalar_lea.vmem %s462_s28, 16  ;;  %p1737_p10 = scmp.lt.s32.totalorder %s462_s28, %s462_s28 }
  0x63   : > { %p1730_p7 = scmp.ne.s32.totalorder %s462_s28, %s1729_s7  ;;  %p1738_p8 = scmp.lt.s32.totalorder %s1729_s7, %s1729_s7 }
  0x65   : > { %p1732_p5 = pnand %p1730_p7, %p1979_p13  ;;  %p1739_p11 = por %p1738_p8, %p1737_p10 }
  0x67   : > { %p1733_p6 = pneg %p1732_p5 }
  0x69   : > { %p1740_p0 = pnand %p1739_p11, %p1733_p6 }
  0x6b   : > { %1743 = shalt.err (!%p1740_p0)
}
  0x6c   : > { %s1834_s29 = smov [#allocation14]   ;;  %p2189_p1 = scmp.ne.s32.totalorder %s2184_s25, 0 }
  0x6d   : > { %1500 = dma.vmem_to_smem (!%p1971_p12), %s462_s28, 16, %s1834_s29, [#allocation5]  }
  0x6e   : > { %482 = sbr.rel (%p2189_p1) target bundleno = 1004 (0x3ec), region = 76  ;;  %p2190_p2 = scmp.eq.s32.totalorder (!%p2189_p1), %s1935_s17, 0 }
  0x73   : > { %1787 = dma.done.wait (%p2190_p2), [#allocation3], 16384   ;;  %p2191_p9 = pmov %p2190_p2 }
  0x74   : > { %p2192_p13 = pmov %p2190_p2 }
  0x75   : > { %1789 = vsyncadd (%p2191_p9), [#allocation3], 4294950912 }
  0x76   : > { %1791 = dma.done.wait (%p2192_p13), [#allocation7], 80   ;;  %p2193_p3 = pmov %p2190_p2 }
  0x77   : > { %p2194_p4 = pmov %p2190_p2 }
  0x78   : > { %1793 = vsyncadd (%p2193_p3), [#allocation7], 4294967216 }
  0x79   : > { %1795 = dma.done.wait (%p2194_p4), [#allocation10], 80   ;;  %p2195_p12 = pmov %p2190_p2 }
  0x7a   : > { %p2196_p7 = pmov %p2190_p2 }
  0x7b   : > { %1797 = vsyncadd (%p2195_p12), [#allocation10], 4294967216 }
  0x7c   : > { %1799 = dma.done.wait (%p2196_p7), [#allocation13], 16   ;;  %p2197_p5 = pmov %p2190_p2 }
  0x7d   : > { %p2198_p6 = pmov %p2190_p2 }
  0x7e   : > { %1801 = vsyncadd (%p2197_p5), [#allocation13], 4294967280 }
  0x7f   : > { %1803 = dma.done.wait (%p2198_p6), [#allocation5], 16   ;;  %p2199_p10 = pmov %p2190_p2 }
  0x81   : > { %1805 = vsyncadd (%p2199_p10), [#allocation5], 4294967280 }
  0x82   : > { %512 = sfence }
  0x83   : > { %p553_p8 = scmp.lt.s32.totalorder %s1935_s17, 1  ;;  %v624_v0 = vld [vmem:[#allocation2 + $0xf8] sm:$0xff]  ;;  %v623_v2 = vld [vmem:[#allocation2 + $0xf0] sm:$0xff]  ;;  %v622_v4 = vld [vmem:[#allocation2 + $0xe8] sm:$0xff]  ;;  %vm1836_vm0 = vmmov 0   ;;  %vm876_vm1 = vcmask 64512  }
  0x84   : > { %v688_v1 = vld [vmem:[#allocation2 + $0x2f8] sm:$0xff]  ;;  %721 = vmatprep.subr.mxu0 %v624_v0  ;;  %v687_v3 = vld [vmem:[#allocation2 + $0x2f0] sm:$0xff]  ;;  %v686_v5 = vld [vmem:[#allocation2 + $0x2e8] sm:$0xff]  ;;  %vm957_vm2 = vcmask 1043456   ;;  %s863_s27 = sld [smem:[#allocation14]]  ;;  %vm953_vm4 = vcmask 31744  }
  0x85   : > { %792 = vmatprep.subr.mxu1 %v688_v1  ;;  %s554_s15 = scalar_select %p553_p8, %s1935_s17, 1  ;;  %722 = vmatpush1.msra.mxu0 %v623_v2  ;;  %v621_v6 = vld [vmem:[#allocation2 + $0xe0] sm:$0xff]  ;;  %v620_v8 = vld [vmem:[#allocation2 + $0xd8] sm:$0xff]  ;;  %v619_v10 = vld [vmem:[#allocation2 + $0xd0] sm:$0xff] }
  0x86   : > { %793 = vmatpush1.msra.mxu1 %v687_v3  ;;  %v685_v7 = vld [vmem:[#allocation2 + $0x2e0] sm:$0xff]  ;;  %723 = vmatprep.subr.mxu0 %v622_v4  ;;  %v684_v9 = vld [vmem:[#allocation2 + $0x2d8] sm:$0xff]  ;;  %v683_v11 = vld [vmem:[#allocation2 + $0x2d0] sm:$0xff]  ;;  %s1407_s3 = sld [smem:[#allocation14 + $0x1]]  ;;  %s550_s18 = sand.u32 1, %s1816_s30  }
  0x87   : > { %794 = vmatprep.subr.mxu1 %v686_v5  ;;  %s1419_s25 = sshll.u32 %s554_s15, 4  ;;  %724 = vmatpush1.msra.mxu0 %v621_v6  ;;  %v618_v12 = vld [vmem:[#allocation2 + $0xc8] sm:$0xff]  ;;  %v617_v14 = vld [vmem:[#allocation2 + $0xc0] sm:$0xff]  ;;  %v616_v18 = vld [vmem:[#allocation2 + $0xb8] sm:$0xff]  ;;  %s1404_s26 = sshll.u32 %s550_s18, 4 }
  0x88   : > { %795 = vmatpush1.msra.mxu1 %v685_v7  ;;  %v682_v13 = vld [vmem:[#allocation2 + $0x2c8] sm:$0xff]  ;;  %s557_s21 = scalar_lea.vmem %s2152_s0, %s1419_s25  ;;  %725 = vmatprep.subr.mxu0 %v620_v8  ;;  %v681_v15 = vld [vmem:[#allocation2 + $0x2c0] sm:$0xff]  ;;  %v680_v20 = vld [vmem:[#allocation2 + $0x2b8] sm:$0xff]  ;;  %s1420_s28 = sshll.u32 %s1935_s17, 8 }
  0x89   : > { %796 = vmatprep.subr.mxu1 %v684_v9  ;;  %v2064_v16 = vld [vmem:[%s557_s21] sm:$0xff]  ;;  %v2066_v17 = vld [vmem:[%s557_s21 + $0x8] sm:$0xff]  ;;  %726 = vmatpush1.msra.mxu0 %v619_v10  ;;  %v615_v21 = vld [vmem:[#allocation2 + $0xb0] sm:$0xff]  ;;  %s552_s19 = scalar_lea.vmem [#allocation15], %s1404_s26  ;;  %s2111_s7 = scalar_lea.hbm %s2166_s14, %s1420_s28 }
  0x8a   : > { %797 = vmatpush1.msra.mxu1 %v683_v11  ;;  %v560_v19 = vadd.f32 %v2066_v17, %v2064_v16  ;;  %727 = vmatprep.subr.mxu0 %v618_v12  ;;  %v679_v22 = vld [vmem:[#allocation2 + $0x2b0] sm:$0xff]  ;;  %v614_v23 = vld [vmem:[#allocation2 + $0xa8] sm:$0xff]  ;;  %v564_v24 = vmax.f32 %v2064_v16, %v2066_v17  ;;  %v613_v26 = vld [vmem:[#allocation2 + $0xa0] sm:$0xff]  ;;  %s1241_s29 = scalar_lea.sflag [#allocation4], %s550_s18  ;;  %p2200_p0 = scmp.ne.s32.totalorder %s2181_s23, 0 }
  0x8b   : > { %798 = vmatprep.subr.mxu1 %v682_v13  ;;  %728 = vmatpush1.msra.mxu0 %v617_v14  ;;  %v678_v25 = vld [vmem:[#allocation2 + $0x2a8] sm:$0xff]  ;;  %v677_v27 = vld [vmem:[#allocation2 + $0x2a0] sm:$0xff]  ;;  %v612_v28 = vld [vmem:[#allocation2 + $0x98] sm:$0xff]  ;;  %s1838_s17 = smov [#allocation15]  }
  0x8c   : > { %799 = vmatpush1.msra.mxu1 %v681_v15  ;;  %561 = vadd.xlane.f32.xlu0 %v560_v19  ;;  %v676_v29 = vld [vmem:[#allocation2 + $0x298] sm:$0xff]  ;;  %v611_v30 = vld [vmem:[#allocation2 + $0x90] sm:$0xff]  ;;  %v610_v32 = vld [vmem:[#allocation2 + $0x88] sm:$0xff]  ;;  %s1748_s25 = sshll.u32 %s1838_s17, 4  ;;  %s1749_s25 = int_to_ptr.vmem [resolvable:$false] %s1748_s25 }
  0x8d   : > { %729 = vmatprep.subr.mxu0 %v616_v18  ;;  %800 = vmatprep.subr.mxu1 %v680_v20  ;;  %v675_v31 = vld [vmem:[#allocation2 + $0x290] sm:$0xff]  ;;  %v674_v33 = vld [vmem:[#allocation2 + $0x288] sm:$0xff]  ;;  %v609_v34 = vld [vmem:[#allocation2 + $0x80] sm:$0xff]  ;;  %v573_v20 = vrot.slane %v2066_v17, 4  ;;  %s1750_s20 = scalar_lea.vmem %s1749_s25, 512 }
  0x8e   : > { %730 = vmatpush1.msra.mxu0 %v615_v21  ;;  %801 = vmatpush1.msra.mxu1 %v679_v22  ;;  %v673_v35 = vld [vmem:[#allocation2 + $0x280] sm:$0xff]  ;;  %v608_v36 = vld [vmem:[#allocation2 + $0x78] sm:$0xff]  ;;  %v607_v38 = vld [vmem:[#allocation2 + $0x70] sm:$0xff] }
  0x8f   : > { %731 = vmatprep.subr.mxu0 %v614_v23  ;;  %802 = vmatprep.subr.mxu1 %v678_v25  ;;  %v672_v37 = vld [vmem:[#allocation2 + $0x278] sm:$0xff]  ;;  %v671_v39 = vld [vmem:[#allocation2 + $0x270] sm:$0xff]  ;;  %v606_v40 = vld [vmem:[#allocation2 + $0x68] sm:$0xff]  ;;  %v567_v25 = vrot.slane %v2064_v16, 4 }
  0x90   : > { %732 = vmatpush1.msra.mxu0 %v613_v26  ;;  %565 = vmax.xlane.f32.xlu0 %v564_v24  ;;  %v670_v41 = vld [vmem:[#allocation2 + $0x268] sm:$0xff]  ;;  %v605_v42 = vld [vmem:[#allocation2 + $0x60] sm:$0xff]  ;;  %v604_v44 = vld [vmem:[#allocation2 + $0x58] sm:$0xff] }
  0x91   : > { %803 = vmatpush1.msra.mxu1 %v677_v27  ;;  %733 = vmatprep.subr.mxu0 %v612_v28  ;;  %v669_v43 = vld [vmem:[#allocation2 + $0x260] sm:$0xff]  ;;  %v668_v45 = vld [vmem:[#allocation2 + $0x258] sm:$0xff]  ;;  %v603_v46 = vld [vmem:[#allocation2 + $0x50] sm:$0xff] }
  0x92   : > { %804 = vmatprep.subr.mxu1 %v676_v29  ;;  %734 = vmatpush1.msra.mxu0 %v611_v30  ;;  %v667_v47 = vld [vmem:[#allocation2 + $0x250] sm:$0xff]  ;;  %v602_v48 = vld [vmem:[#allocation2 + $0x48] sm:$0xff]  ;;  %v601_v50 = vld [vmem:[#allocation2 + $0x40] sm:$0xff]  ;;  %v574_v30 = vadd.f32 %v573_v20, %v2066_v17 }
  0x93   : > { %805 = vmatpush1.msra.mxu1 %v675_v31  ;;  %735 = vmatprep.subr.mxu0 %v610_v32  ;;  %v666_v49 = vld [vmem:[#allocation2 + $0x248] sm:$0xff]  ;;  %v665_v51 = vld [vmem:[#allocation2 + $0x240] sm:$0xff]  ;;  %v600_v52 = vld [vmem:[#allocation2 + $0x38] sm:$0xff] }
  0x94   : > { %806 = vmatprep.subr.mxu1 %v674_v33  ;;  %736 = vmatpush1.msra.mxu0 %v609_v34  ;;  %v664_v53 = vld [vmem:[#allocation2 + $0x238] sm:$0xff]  ;;  %v599_v54 = vld [vmem:[#allocation2 + $0x30] sm:$0xff]  ;;  %v598_v56 = vld [vmem:[#allocation2 + $0x28] sm:$0xff] }
  0x95   : > { %807 = vmatpush1.msra.mxu1 %v673_v35  ;;  %737 = vmatprep.subr.mxu0 %v608_v36  ;;  %v663_v55 = vld [vmem:[#allocation2 + $0x230] sm:$0xff]  ;;  %v662_v57 = vld [vmem:[#allocation2 + $0x228] sm:$0xff]  ;;  %v597_v58 = vld [vmem:[#allocation2 + $0x20] sm:$0xff]  ;;  %v568_v35 = vadd.f32 %v567_v25, %v2064_v16 }
  0x96   : > { %808 = vmatprep.subr.mxu1 %v672_v37  ;;  %738 = vmatpush1.msra.mxu0 %v607_v38  ;;  %v661_v59 = vld [vmem:[#allocation2 + $0x220] sm:$0xff]  ;;  %v596_v60 = vld [vmem:[#allocation2 + $0x18] sm:$0xff]  ;;  %v595_v62 = vld [vmem:[#allocation2 + $0x10] sm:$0xff] }
  0x97   : > { %809 = vmatpush1.msra.mxu1 %v671_v39  ;;  %739 = vmatprep.subr.mxu0 %v606_v40  ;;  %v660_v61 = vld [vmem:[#allocation2 + $0x218] sm:$0xff]  ;;  %v659_v63 = vld [vmem:[#allocation2 + $0x210] sm:$0xff]  ;;  %v594_v0 = vld [vmem:[#allocation2 + $0x8] sm:$0xff]  ;;  %v575_v40 = vrot.slane %v574_v30, 2 }
  0x98   : > { %810 = vmatprep.subr.mxu1 %v670_v41  ;;  %740 = vmatpush1.msra.mxu0 %v605_v42  ;;  %v658_v1 = vld [vmem:[#allocation2 + $0x208] sm:$0xff]  ;;  %v593_v2 = vld [vmem:[#allocation2] sm:$0xff]  ;;  %v656_v4 = vld [vmem:[#allocation2 + $0x1f8] sm:$0xff] }
  0x99   : > { %811 = vmatpush1.msra.mxu1 %v669_v43  ;;  %741 = vmatprep.subr.mxu0 %v604_v44  ;;  %v657_v3 = vld [vmem:[#allocation2 + $0x200] sm:$0xff]  ;;  %v720_v5 = vld [vmem:[#allocation2 + $0x3f8] sm:$0xff]  ;;  %v655_v6 = vld [vmem:[#allocation2 + $0x1f0] sm:$0xff]  ;;  %v588_v43 = vmax.f32 %v2066_v17, %v573_v20 }
  0x9a   : > { %812 = vmatprep.subr.mxu1 %v668_v45  ;;  %742 = vmatpush1.msra.mxu0 %v603_v46  ;;  %v719_v7 = vld [vmem:[#allocation2 + $0x3f0] sm:$0xff]  ;;  %v654_v8 = vld [vmem:[#allocation2 + $0x1e8] sm:$0xff]  ;;  %v653_v10 = vld [vmem:[#allocation2 + $0x1e0] sm:$0xff]  ;;  %v569_v46 = vrot.slane %v568_v35, 2 }
  0x9b   : > { %813 = vmatpush1.msra.mxu1 %v667_v47  ;;  %743 = vmatprep.subr.mxu0 %v602_v48  ;;  %v718_v9 = vld [vmem:[#allocation2 + $0x3e8] sm:$0xff]  ;;  %v717_v11 = vld [vmem:[#allocation2 + $0x3e0] sm:$0xff]  ;;  %v652_v12 = vld [vmem:[#allocation2 + $0x1d8] sm:$0xff]  ;;  %v582_v47 = vmax.f32 %v2064_v16, %v567_v25 }
  0x9c   : > { %814 = vmatprep.subr.mxu1 %v666_v49  ;;  %744 = vmatpush1.msra.mxu0 %v601_v50  ;;  %v716_v13 = vld [vmem:[#allocation2 + $0x3d8] sm:$0xff]  ;;  %v651_v14 = vld [vmem:[#allocation2 + $0x1d0] sm:$0xff]  ;;  %v650_v18 = vld [vmem:[#allocation2 + $0x1c8] sm:$0xff] }
  0x9d   : > { %815 = vmatpush1.msra.mxu1 %v665_v51  ;;  %745 = vmatprep.subr.mxu0 %v600_v52  ;;  %v715_v15 = vld [vmem:[#allocation2 + $0x3d0] sm:$0xff]  ;;  %v714_v19 = vld [vmem:[#allocation2 + $0x3c8] sm:$0xff]  ;;  %v649_v21 = vld [vmem:[#allocation2 + $0x1c0] sm:$0xff]  ;;  %v576_v52 = vadd.f32 %v575_v40, %v574_v30  ;;  %v583_v16 = vrot.slane %v582_v47, 2 }
  0x9e   : > { %816 = vmatprep.subr.mxu1 %v664_v53  ;;  %746 = vmatpush1.msra.mxu0 %v599_v54  ;;  %v713_v22 = vld [vmem:[#allocation2 + $0x3c0] sm:$0xff]  ;;  %v648_v23 = vld [vmem:[#allocation2 + $0x1b8] sm:$0xff]  ;;  %v647_v26 = vld [vmem:[#allocation2 + $0x1b0] sm:$0xff]  ;;  %v589_v54 = vrot.slane %v588_v43, 2 }
  0x9f   : > { %817 = vmatpush1.msra.mxu1 %v663_v55  ;;  %747 = vmatprep.subr.mxu0 %v598_v56  ;;  %v712_v24 = vld [vmem:[#allocation2 + $0x3b8] sm:$0xff]  ;;  %v711_v27 = vld [vmem:[#allocation2 + $0x3b0] sm:$0xff]  ;;  %v646_v28 = vld [vmem:[#allocation2 + $0x1a8] sm:$0xff] }
  0xa0   : > { %818 = vmatprep.subr.mxu1 %v662_v57  ;;  %748 = vmatpush1.msra.mxu0 %v597_v58  ;;  %v710_v29 = vld [vmem:[#allocation2 + $0x3a8] sm:$0xff]  ;;  %v645_v31 = vld [vmem:[#allocation2 + $0x1a0] sm:$0xff]  ;;  %v644_v33 = vld [vmem:[#allocation2 + $0x198] sm:$0xff]  ;;  %v570_v57 = vadd.f32 %v569_v46, %v568_v35 }
  0xa1   : > { %819 = vmatpush1.msra.mxu1 %v661_v59  ;;  %749 = vmatprep.subr.mxu0 %v596_v60  ;;  %v709_v32 = vld [vmem:[#allocation2 + $0x3a0] sm:$0xff]  ;;  %v708_v34 = vld [vmem:[#allocation2 + $0x398] sm:$0xff]  ;;  %v643_v36 = vld [vmem:[#allocation2 + $0x190] sm:$0xff] }
  0xa2   : > { %820 = vmatprep.subr.mxu1 %v660_v61  ;;  %750 = vmatpush1.msra.mxu0 %v595_v62  ;;  %v707_v37 = vld [vmem:[#allocation2 + $0x390] sm:$0xff]  ;;  %v642_v38 = vld [vmem:[#allocation2 + $0x188] sm:$0xff]  ;;  %v641_v41 = vld [vmem:[#allocation2 + $0x180] sm:$0xff]  ;;  %v577_v62 = vrot.slane %v576_v52, 1 }
  0xa3   : > { %821 = vmatpush1.msra.mxu1 %v659_v63  ;;  %751 = vmatprep.subr.mxu0 %v594_v0  ;;  %v706_v39 = vld [vmem:[#allocation2 + $0x388] sm:$0xff]  ;;  %v705_v42 = vld [vmem:[#allocation2 + $0x380] sm:$0xff]  ;;  %v640_v44 = vld [vmem:[#allocation2 + $0x178] sm:$0xff] }
  0xa4   : > { %822 = vmatprep.subr.mxu1 %v658_v1  ;;  %752 = vmatpush1.msra.mxu0 %v593_v2  ;;  %v704_v45 = vld [vmem:[#allocation2 + $0x378] sm:$0xff]  ;;  %v639_v48 = vld [vmem:[#allocation2 + $0x170] sm:$0xff]  ;;  %v638_v50 = vld [vmem:[#allocation2 + $0x168] sm:$0xff]  ;;  %v590_v1 = vmax.f32 %v588_v43, %v589_v54  ;;  %v1113_v54 = vstv %s1407_s3 }
  0xa5   : > { %823 = vmatpush1.msra.mxu1 %v657_v3  ;;  %753 = vmatprep.subr.mxu0 %v656_v4  ;;  %v703_v49 = vld [vmem:[#allocation2 + $0x370] sm:$0xff]  ;;  %v702_v51 = vld [vmem:[#allocation2 + $0x368] sm:$0xff]  ;;  %v637_v53 = vld [vmem:[#allocation2 + $0x160] sm:$0xff]  ;;  %v571_v4 = vrot.slane %v570_v57, 1 }
  0xa6   : > { %824 = vmatprep.subr.mxu1 %v720_v5  ;;  %754 = vmatpush2.msra.mxu0 %v655_v6  ;;  %v701_v17 = vld [vmem:[#allocation2 + $0x360] sm:$0xff]  ;;  %v636_v55 = vld [vmem:[#allocation2 + $0x158] sm:$0xff]  ;;  %v635_v58 = vld [vmem:[#allocation2 + $0x150] sm:$0xff]  ;;  %v584_v5 = vmax.f32 %v582_v47, %v583_v16 }
  0xa7   : > { %825 = vmatpush2.msra.mxu1 %v719_v7  ;;  %755 = vmatprep.subr.mxu0 %v654_v8  ;;  %v700_v56 = vld [vmem:[#allocation2 + $0x358] sm:$0xff]  ;;  %v699_v59 = vld [vmem:[#allocation2 + $0x350] sm:$0xff]  ;;  %v634_v60 = vld [vmem:[#allocation2 + $0x148] sm:$0xff] }
  0xa8   : > { %826 = vmatprep.subr.mxu1 %v718_v9  ;;  %756 = vmatpush2.msra.mxu0 %v653_v10  ;;  %v698_v61 = vld [vmem:[#allocation2 + $0x348] sm:$0xff]  ;;  %v633_v63 = vld [vmem:[#allocation2 + $0x140] sm:$0xff]  ;;  %v632_v2 = vld [vmem:[#allocation2 + $0x138] sm:$0xff]  ;;  %v578_v10 = vadd.f32 %v577_v62, %v576_v52 }
  0xa9   : > { %827 = vmatpush2.msra.mxu1 %v717_v11  ;;  %757 = vmatprep.subr.mxu0 %v652_v12  ;;  %v697_v0 = vld [vmem:[#allocation2 + $0x340] sm:$0xff]  ;;  %v696_v3 = vld [vmem:[#allocation2 + $0x338] sm:$0xff]  ;;  %v631_v6 = vld [vmem:[#allocation2 + $0x130] sm:$0xff] }
  0xaa   : > { %828 = vmatprep.subr.mxu1 %v716_v13  ;;  %758 = vmatpush2.msra.mxu0 %v651_v14  ;;  %v695_v7 = vld [vmem:[#allocation2 + $0x330] sm:$0xff]  ;;  %v630_v8 = vld [vmem:[#allocation2 + $0x128] sm:$0xff]  ;;  %v629_v11 = vld [vmem:[#allocation2 + $0x120] sm:$0xff]  ;;  %v591_v13 = vrot.slane %v590_v1, 1 }
  0xab   : > { %829 = vmatpush2.msra.mxu1 %v715_v15  ;;  %759 = vmatprep.subr.mxu0 %v650_v18  ;;  %v694_v9 = vld [vmem:[#allocation2 + $0x328] sm:$0xff]  ;;  %v693_v12 = vld [vmem:[#allocation2 + $0x320] sm:$0xff]  ;;  %v628_v14 = vld [vmem:[#allocation2 + $0x118] sm:$0xff]  ;;  %v572_v18 = vadd.f32 %v571_v4, %v570_v57 }
  0xac   : > { %830 = vmatprep.subr.mxu1 %v714_v19  ;;  %760 = vmatpush2.msra.mxu0 %v649_v21  ;;  %v692_v15 = vld [vmem:[#allocation2 + $0x318] sm:$0xff]  ;;  %v585_v19 = vrot.slane %v584_v5, 1  ;;  %v627_v20 = vld [vmem:[#allocation2 + $0x110] sm:$0xff]  ;;  %v625_v25 = vld [vmem:[#allocation2 + $0x100] sm:$0xff] }
  0xad   : > { %831 = vmatpush2.msra.mxu1 %v713_v22  ;;  %761 = vmatprep.subr.mxu0 %v648_v23  ;;  %v691_v21 = vld [vmem:[#allocation2 + $0x310] sm:$0xff]  ;;  %v626_v22 = vld [vmem:[#allocation2 + $0x108] sm:$0xff]  ;;  %v865_v30 = vld [vmem:[%s2154_s2] sm:$0xff] }
  0xae   : > { %832 = vmatprep.subr.mxu1 %v712_v24  ;;  %762 = vmatpush2.msra.mxu0 %v647_v26  ;;  %v690_v23 = vld [vmem:[#allocation2 + $0x308] sm:$0xff]  ;;  %v580_v24 = vmul.f32 0.125, %v578_v10  ;;  %v592_v26 = vmax.f32 %v590_v1, %v591_v13  ;;  %v866_v47 = vld [vmem:[#allocation6] sm:$0x1]  ;;  %v1032_v52 = vld [vmem:[#allocation9] sm:$0x1] }
  0xaf   : > { %833 = vmatpush2.msra.mxu1 %v711_v27  ;;  %763 = vmatprep.subr.mxu0 %v646_v28  ;;  %v689_v27 = vld [vmem:[#allocation2 + $0x300] sm:$0xff]  ;;  %v579_v28 = vmul.f32 0.125, %v572_v18 }
  0xb0   : > { %834 = vmatprep.subr.mxu1 %v710_v29  ;;  %764 = vmatpush2.msra.mxu0 %v645_v31  ;;  %v586_v29 = vmax.f32 %v584_v5, %v585_v19  ;;  %v1835_v31 = vmov 0.0   ;;  %v1211_v18 = vld [vmem:[%s2164_s12] sm:$0xff] }
  0xb1   : > { %835 = vmatpush2.msra.mxu1 %v709_v32  ;;  %765 = vmatprep.subr.mxu0 %v644_v33  ;;  %v870_v32 = vlaneseq }
  0xb2   : > { %836 = vmatprep.subr.mxu1 %v708_v34  ;;  %766 = vmatpush2.msra.mxu0 %v643_v36 }
  0xb3   : > { %837 = vmatpush2.msra.mxu1 %v707_v37  ;;  %767 = vmatprep.subr.mxu0 %v642_v38  ;;  %v871_v33 = vand.u32 127, %v870_v32  ;;  %v873_v34 = vshrl.u32 %v870_v32, 7 }
  0xb4   : > { %838 = vmatprep.subr.mxu1 %v706_v39  ;;  %768 = vmatpush2.msra.mxu0 %v641_v41  ;;  %v1031_v39 = vld [vmem:[%s2158_s6] sm:$0xff] }
  0xb5   : > { %839 = vmatpush2.msra.mxu1 %v705_v42  ;;  %769 = vmatprep.subr.mxu0 %v640_v44  ;;  %v874_v35 = vsub.s32 %v871_v33, %v873_v34  ;;  %v867_v42 = vld [vmem:[#allocation8] sm:$0xf] }
  0xb6   : > { %840 = vmatprep.subr.mxu1 %v704_v45  ;;  %770 = vmatpush2.msra.mxu0 %v639_v48 }
  0xb7   : > { %841 = vmatpush2.msra.mxu1 %v703_v49  ;;  %771 = vmatprep.subr.mxu0 %v638_v50  ;;  %v950_v49 = vstv %s863_s27  ;;  %s1255_s27 = sshll.u32 %s552_s19, 4  ;;  %s2113_s27 = int_to_ptr.vmem [resolvable:$true] %s1255_s27 }
  0xb8   : > { %842 = vmatprep.subr.mxu1 %v702_v51  ;;  %772 = vmatpush2.msra.mxu0 %v637_v53  ;;  %s1744_s15 = scalar_lea.vmem %s2113_s27, 256  ;;  %p1751_p9 = scmp.lt.s32.totalorder %s2113_s27, %s1749_s25 }
  0xb9   : > { %843 = vmatpush2.msra.mxu1 %v701_v17  ;;  %773 = vmatprep.subr.mxu0 %v636_v55  ;;  %v1033_v55 = vld [vmem:[#allocation11] sm:$0xf]  ;;  %p1745_p11 = scmp.ne.s32.totalorder %s2113_s27, %s1744_s15  ;;  %p1752_p13 = scmp.lt.s32.totalorder %s1750_s20, %s1744_s15 }
  0xba   : > { %844 = vmatprep.subr.mxu1 %v700_v56  ;;  %774 = vmatpush2.msra.mxu0 %v635_v58 }
  0xbb   : > { %845 = vmatpush2.msra.mxu1 %v699_v59  ;;  %775 = vmatprep.subr.mxu0 %v634_v60  ;;  %p1746_p1 = pnand %p1745_p11, %p2200_p0  ;;  %p1753_p3 = por %p1752_p13, %p1751_p9 }
  0xbc   : > { %846 = vmatprep.subr.mxu1 %v698_v61  ;;  %776 = vmatpush2.msra.mxu0 %v633_v63  ;;  %v868_v61 = vld [vmem:[%s2157_s5] sm:$0x1] }
  0xbd   : > { %847 = vmatpush2.msra.mxu1 %v697_v0  ;;  %777 = vmatprep.subr.mxu0 %v632_v2  ;;  %v1034_v0 = vld [vmem:[#allocation12] sm:$0x1]  ;;  %p1747_p2 = pneg %p1746_p1 }
  0xbe   : > { %848 = vmatprep.subr.mxu1 %v696_v3  ;;  %778 = vmatpush2.msra.mxu0 %v631_v6  ;;  %v1196_v3 = vsub.s32 0, %v873_v34  ;;  %v1193_v6 = vld [vmem:[%s2163_s11] sm:$0xff] }
  0xbf   : > { %849 = vmatpush2.msra.mxu1 %v695_v7  ;;  %779 = vmatprep.subr.mxu0 %v630_v8  ;;  %p1754_p4 = pnand %p1753_p3, %p1747_p2 }
  0xc0   : > { %850 = vmatprep.subr.mxu1 %v694_v9  ;;  %780 = vmatpush2.msra.mxu0 %v629_v11  ;;  %v1192_v9 = vld [vmem:[%s2162_s10] sm:$0xff] }
  0xc1   : > { %851 = vmatpush2.msra.mxu1 %v693_v12  ;;  %781 = vmatprep.subr.mxu0 %v628_v14  ;;  %v1837_v14 = vmov 0  }
  0xc2   : > { %852 = vmatprep.subr.mxu1 %v692_v15  ;;  %782 = vmatpush2.msra.mxu0 %v627_v20 }
  0xc3   : > { %853 = vmatpush2.msra.mxu1 %v691_v21  ;;  %783 = vmatprep.subr.mxu0 %v626_v22 }
  0xc4   : > { %854 = vmatprep.subr.mxu1 %v690_v23  ;;  %784 = vmatpush2.msra.mxu0 %v625_v25 }
  0xc5   : > { %785 = vmatprep.mubr.f32.mxu0 %v580_v24  ;;  %855 = vmatpush2.msra.mxu1 %v689_v27 }
  0xc6   : > { %856 = vmatprep.mubr.f32.mxu1 %v592_v26  ;;  %786 = vmatmul.mubr.f32.vlgmr.msra.gmra.mxu0 %v579_v28 }
  0xc7   : > { %857 = vmatmul.mubr.f32.vlgmr.msra.gmra.mxu1 %v586_v29  ;;  %1429 = vmatprep.subr.mxu0 %v1835_v31 }
  0xc8   : > { %1431 = vmatprep.mubr.msk.f32.mxu0 %vm1836_vm0, %v1835_v31  ;;  %1430 = vmatpush3.msra.mxu0 %v865_v30 }
  0xc9   : > { %1434 = vmatprep.subr.mxu1 %v1835_v31  ;;  %1439 = vmatprep.subr.mxu0 %v1835_v31 }
  0xca   : > { %1436 = vmatprep.mubr.msk.f32.mxu1 %vm1836_vm0, %v1835_v31  ;;  %1435 = vmatpush3.msk.msra.mxu1 %vm957_vm2, %v867_v42 }
  0xcb   : > { %1444 = vmatprep.subr.mxu1 %v1835_v31  ;;  %1564 = vset.pattern.permute.xlu0 %v1837_v14 }
 0x115   : > { %v562_v36 = vpop.xlane.xlu0 %561 }
 0x116   : > { %v563_v37 = vmul.f32 0.00390625, %v562_v36 }
 0x118   : > { %v875_v38 = vrot.slane %v563_v37, %v874_v35 }
 0x119   : > { %v566_v40 = vpop.xlane.xlu0 %565 }
 0x11a   : > { %1432 = vmatmul.mubr.msk.f32.vlgmr.msra.gmra.mxu0 %vm876_vm1, %v875_v38  ;;  %v1039_v41 = vrot.slane %v566_v40, %v874_v35 }
 0x11b   : > { %1440 = vmatpush3.msra.mxu0 %v1031_v39  ;;  %1441 = vmatprep.mubr.msk.f32.mxu0 %vm1836_vm0, %v1835_v31 }
 0x11e   : > { %1442 = vmatmul.mubr.msk.f32.vlgmr.msra.gmra.mxu0 %vm876_vm1, %v1039_v41 }
 0x186   : > { %v787_v43 = vpop.f32.mrf.mxu0 }
 0x187   : > { %v858_v44 = vpop.f32.mrf.mxu1 }
 0x188   : > { %v859_v45 = vadd.f32 %v858_v44, %v787_v43  ;;  %v789_v46 = vpop.f32.mrf.mxu0 }
 0x189   : > { %v860_v60 = vpop.f32.mrf.mxu1 }
 0x18a   : > { %v861_v22 = vadd.f32 %v860_v60, %v789_v46  ;;  %v1221_v23 = vrot.slane %v859_v45, %v1196_v3 }
 0x18c   : > { %v1225_v24 = vrot.slane %v861_v22, %v1196_v3 }
 0x1da   : > { %v945_v48 = vpop.f32.mrf.mxu0 }
 0x1db   : > { %v946_v50 = vadd.f32 %v945_v48, %v866_v47 }
 0x1dc   : > { %v1433_v51 = vpop.f32.mrf.mxu0 }
 0x1dd   : > { %vm949_vm3 = vcmp.gt.f32.partialorder %v946_v50, 0.0  ;;  %v951_v53 = vmul.f32 %v950_v49, %v946_v50 }
 0x1de   : > { %v1108_v17 = vpop.f32.mrf.mxu0 }
 0x1df   : > { %v952_v56 = vsel %vm949_vm3, %v946_v50, %v951_v53  ;;  %v1109_v57 = vadd.f32 %v1108_v17, %v1032_v52 }
 0x1e0   : > { %1437 = vmatmul.mubr.msk.f32.vlgmr.msra.gmra.mxu1 %vm953_vm4, %v952_v56  ;;  %v1443_v16 = vpop.f32.mrf.mxu0 }
 0x1e1   : > { %vm1112_vm5 = vcmp.gt.f32.partialorder %v1109_v57, 0.0  ;;  %v1114_v58 = vmul.f32 %v1113_v54, %v1109_v57  ;;  %1445 = vmatpush3.msk.msra.mxu1 %vm957_vm2, %v1033_v55  ;;  %1446 = vmatprep.mubr.msk.f32.mxu1 %vm1836_vm0, %v1835_v31 }
 0x1e3   : > { %v1115_v59 = vsel %vm1112_vm5, %v1109_v57, %v1114_v58 }
 0x1e4   : > { %1447 = vmatmul.mubr.msk.f32.vlgmr.msra.gmra.mxu1 %vm953_vm4, %v1115_v59 }
 0x2a0   : > { %v1027_v62 = vpop.f32.mrf.mxu1 }
 0x2a1   : > { %v1028_v1 = vadd.f32 %v1027_v62, %v868_v61 }
 0x2a2   : > { %v1438_v63 = vpop.f32.mrf.mxu1 }
 0x2a3   : > { %v1205_v7 = vrot.slane %v1028_v1, %v1196_v3 }
 0x2a4   : > { %v1188_v2 = vpop.f32.mrf.mxu1 }
 0x2a5   : > { %v1189_v4 = vadd.f32 %v1188_v2, %v1034_v0  ;;  %v1206_v12 = vmul.f32 %v1205_v7, %v1192_v9 }
 0x2a6   : > { %v1448_v5 = vpop.f32.mrf.mxu1 }
 0x2a7   : > { %v1197_v8 = vrot.slane %v1189_v4, %v1196_v3  ;;  %v1207_v13 = vsel %vm876_vm1, %v1206_v12, 0.0 }
 0x2a9   : > { %v1198_v10 = vmul.f32 %v1197_v8, %v1193_v6 }
 0x2ab   : > { %v1199_v11 = vsel %vm876_vm1, %v1198_v10, 0.0 }
 0x2ac   : > { %1200 = vadd.xlane.f32.xlu1 %v1199_v11 }
 0x2b0   : > { %1208 = vadd.xlane.f32.xlu1 %v1207_v13 }
 0x335   : > { %v1201_v15 = vpop.xlane.xlu1 %1200 }
 0x339   : > { %v1209_v19 = vpop.xlane.xlu1 %1208 }
 0x33a   : > { %v1210_v20 = vadd.f32 %v1209_v19, %v1201_v15 }
 0x33c   : > { %v1212_v21 = vadd.f32 %v1211_v18, %v1210_v20 }
 0x33e   : > { %1215 = vperm.xlu0 %1564, %v1212_v21  }
 0x3b9   : > { %v1216_v25 = vpop.permute.xlu0 %1215 }
 0x3ba   : > { %v1226_v26 = vmul.f32 %v1221_v23, %v1216_v25  ;;  %v1227_v27 = vmul.f32 %v1225_v24, %v1216_v25 }
 0x3bc   : > { %v1228_v28 = vsub.f32 0.0, %v1226_v26  ;;  %v1229_v29 = vsub.f32 0.0, %v1227_v27 }
 0x3be   : > { %v1230_v30 = vmul.f32 1.442695, %v1228_v28  ;;  %v1232_v31 = vmul.f32 1.442695, %v1229_v29 }
 0x3c0   : > { %1565 = vpow2.f32 %v1230_v30 }
 0x3c1   : > { %1567 = vpow2.f32 %v1232_v31 }
 0x3cd   : > { %v1566_v32 = vpop.eup %1565 }
 0x3ce   : > { %v1568_v33 = vpop.eup %1567  ;;  %v1234_v34 = vadd.f32 1.0, %v1566_v32 }
 0x3cf   : > { %v1235_v35 = vadd.f32 1.0, %v1568_v33 }
 0x3d0   : > { %1569 = vrcp.f32 %v1234_v34 }
 0x3d1   : > { %1571 = vrcp.f32 %v1235_v35 }
 0x3dd   : > { %v1570_v36 = vpop.eup %1569 }
 0x3de   : > { %v1572_v37 = vpop.eup %1571  ;;  %1238 = vst [vmem:[%s552_s19] sm:$0xff] %v1570_v36 }
 0x3df   : > { %1239 = vst [vmem:[%s552_s19 + $0x8] sm:$0xff] %v1572_v37 }
 0x3e0   : > { %1757 = shalt.err (!%p1754_p4)
}
 0x3e1   : > { %s1758_s24 = scalar_lea.hbm %s2111_s7, 256  ;;  %s1762_s26 = scalar_lea.hbm %s2166_s14, 512 }
 0x3e2   : > { %p1759_p12 = scmp.ne.s32.totalorder %s2111_s7, %s1758_s24  ;;  %p1763_p6 = scmp.lt.s32.totalorder %s2111_s7, %s2166_s14 }
 0x3e3   : > { %p1764_p10 = scmp.lt.s32.totalorder %s1762_s26, %s1758_s24 }
 0x3e4   : > { %p1760_p7 = pnand %p1759_p12, %p2200_p0 }
 0x3e5   : > { %p1765_p8 = por %p1764_p10, %p1763_p6 }
 0x3e6   : > { %p1761_p5 = pneg %p1760_p7 }
 0x3e8   : > { %p1766_p11 = pnand %p1765_p8, %p1761_p5 }
 0x3ea   : > { %1769 = shalt.err (!%p1766_p11)
}
 0x3eb   : > { %1477 = dma.vmem_to_hbm [thread:$0]  (%p2200_p0), %s2113_s27, 256, %s2111_s7, %s1241_s29  }
 0x3ec PF: > { %s2201_s3 = sld [smem:[#allocation22_spill]]  ;;  %p1519_p1 = scmp.ge.s32.totalorder %s1824_s16, 2 }
 0x3ed   : > { %s2202_s22 = sld [smem:[#allocation26_spill]] }
 0x3f2   : > { %s1267_s15 = sand.u32 1, %s2201_s3  }
 0x3f3   : > { %p2203_p2 = scmp.ne.s32.totalorder %s2202_s22, 0  ;;  %s1268_s17 = scalar_lea.sflag [#allocation4], %s1267_s15 }
 0x3f5   : > { %p1502_p9 = pnand %p1519_p1, %p2203_p2 }
 0x3f7   : > { %p1503_p13 = pneg %p1502_p9 }
 0x3f9   : > { %1807 = dma.done.wait (%p1503_p13), %s1268_s17, 256  }
 0x3fa   : > { %1809 = vsyncadd (%p1503_p13), %s1268_s17, 4294967040  ;;  %s2204_s16 = sld [smem:[#allocation24_spill]]  ;;  %s2207_s29 = smov %s1816_s30 }
 0x3fb   : > { %s2205_s25 = sld [smem:[#allocation23_spill]] }
 0x3fc   : > { %s2206_s15 = sld [smem:[#allocation25_spill]] }
 0x400   : > { %p29_p3 = scmp.ge.s32.totalorder %s2204_s16, 4  }
 0x401   : > { %s2208_s30 = smov %s2205_s25 }
 0x402   :  { %31 = sbr.rel (!%p29_p3) target bundleno = 11 (0xb), region = 141 }
 0x407   :  { %1273 = vsyncpa [#allocation3], 1 }
 0x408   :  { %1275 = vsyncpa [#allocation3 + $0x1], 1 }
 0x409   :  { %1276 = vsyncpa [#allocation7], 1 }
 0x40a   :  { %1277 = vsyncpa [#allocation10], 1 }
 0x40b   :  { %1278 = vsyncpa [#allocation13], 1 }
 0x40c   :  { %1279 = vsyncpa [#allocation4], 1 }
 0x40d   :  { %1281 = vsyncpa [#allocation4 + $0x1], 1 }
 0x40e   :  { %1282 = vsyncpa [#allocation5], 1 }
 0x40f   :  { %1284 = vsyncpa [#allocation5 + $0x1], 1 }

</bundles_post_ra>
